<compile_context>
chip_gen: v7x
topology: tpu7x:2x2x1
jax: 0.10.0
libtpu: 0.0.40
codegen_flags: <defaults>
</compile_context>

<pallas_src>
import jax
import jax.numpy as jnp
from jax import lax
from jax.experimental import pallas as pl
from jax.experimental.pallas import tpu as pltpu

INPUT_SIZE = 128
HIDDEN_SIZE = 64
OUT_SIZE = 5


def lstm_kernel(x_ref, h0_ref, c0_ref, wih_ref, whh_ref, b_ref,
                wlin_ref, blin_ref, last_h_ref, pred_ref):
    T, Bb, D = x_ref.shape          # time-major batch tile
    H = HIDDEN_SIZE

    # ---- Hoisted input projection: one big-M bf16 matmul, f32 accumulation ----
    x = x_ref[...].astype(jnp.bfloat16).reshape(T * Bb, D)        # time-major rows
    xproj = jnp.dot(x, wih_ref[...],
                    preferred_element_type=jnp.float32)           # (T*Bb, 4H) f32
    xproj = xproj + b_ref[...]                                    # combined b_ih+b_hh

    whh = whh_ref[...]                                            # (H, 4H) bf16, resident
    h = h0_ref[...].astype(jnp.float32)                           # (Bb, H) f32 carry
    c = c0_ref[...].astype(jnp.float32)                           # (Bb, H) f32 carry

    def cell(gate_in, h, c):
        # bf16 MXU operands, f32 accumulate; carries stay f32.
        gates = gate_in + jnp.dot(h.astype(jnp.bfloat16), whh,
                                  preferred_element_type=jnp.float32)   # (Bb, 4H)
        # Gate layout pre-permuted offline to [i, f, o, g]:
        #   sigmoid over the first 3H columns only, tanh over the last H only.
        sg = jax.nn.sigmoid(gates[:, :3 * H])
        g_g = jnp.tanh(gates[:, 3 * H:])
        i_g = sg[:, 0 * H:1 * H]
        f_g = sg[:, 1 * H:2 * H]
        o_g = sg[:, 2 * H:3 * H]
        c_new = f_g * c + i_g * g_g
        h_new = o_g * jnp.tanh(c_new)
        return h_new, c_new

    # ---- Recurrence: h/c carried in vregs; only (Bb,H)x(H,4H) on the serial path ----
    if T <= 32:
        # Fully unrolled; per-step gate input is a contiguous sublane-row slice.
        for t in range(T):
            h, c = cell(xproj[t * Bb:(t + 1) * Bb], h, c)
    else:
        # Bound live ranges / code size for long sequences.
        def body(t, carry):
            h_t, c_t = carry
            g_in = lax.dynamic_slice_in_dim(xproj, t * Bb, Bb, axis=0)
            return cell(g_in, h_t, c_t)
        h, c = lax.fori_loop(0, T, body, (h, c), unroll=8)

    # ---- Outputs: final hidden state + fused Linear(64,5)+Sigmoid head ----
    # (dropout is eval-mode identity, so head input == final hidden state)
    last_h_ref[...] = h.astype(last_h_ref.dtype)
    logits = jnp.dot(h, wlin_ref[...],
                     preferred_element_type=jnp.float32) + blin_ref[...]
    pred_ref[...] = jax.nn.sigmoid(logits).astype(pred_ref.dtype)


def _pick_batch_block(B):
    """Batch tile: full batch when small, else a multiple-of-8 divisor capped at 128."""
    if B <= 128:
        return B
    for cand in (128, 64, 32, 16, 8):
        if B % cand == 0:
            return cand
    return B


def my_lstm_forward(x, h0, c0, params):
    """x: (B, T, 128) float32 (batch-first, as in PyTorch). Returns (last_hidden, pred).

    Note: h0/c0 are (B, H) (PyTorch uses (num_layers, B, H); 1 layer here).
    """
    B, T, D = x.shape
    assert D == INPUT_SIZE
    wih_t, whh_t, b, wlin_t, blin = params   # pre-permuted/transposed, bf16 weights

    # Time-major layout so the per-step xproj read inside the recurrence is a
    # contiguous sublane-row block (layout plumbing in the wrapper is free).
    x_tm = jnp.transpose(x, (1, 0, 2))       # (T, B, D)

    bb = _pick_batch_block(B)
    grid = (B // bb,)

    H4 = 4 * HIDDEN_SIZE
    in_specs = [
        pl.BlockSpec((T, bb, D), lambda i: (0, i, 0)),            # x (time-major)
        pl.BlockSpec((bb, HIDDEN_SIZE), lambda i: (i, 0)),        # h0
        pl.BlockSpec((bb, HIDDEN_SIZE), lambda i: (i, 0)),        # c0
        pl.BlockSpec((INPUT_SIZE, H4), lambda i: (0, 0)),         # W_ih^T (bf16)
        pl.BlockSpec((HIDDEN_SIZE, H4), lambda i: (0, 0)),        # W_hh^T (bf16)
        pl.BlockSpec((1, H4), lambda i: (0, 0)),                  # bias (f32)
        pl.BlockSpec((HIDDEN_SIZE, OUT_SIZE), lambda i: (0, 0)),  # W_lin^T
        pl.BlockSpec((1, OUT_SIZE), lambda i: (0, 0)),            # b_lin
    ]
    out_specs = (
        pl.BlockSpec((bb, HIDDEN_SIZE), lambda i: (i, 0)),
        pl.BlockSpec((bb, OUT_SIZE), lambda i: (i, 0)),
    )

    last_hidden, pred = pl.pallas_call(
        lstm_kernel,
        out_shape=(
            jax.ShapeDtypeStruct((B, HIDDEN_SIZE), x.dtype),
            jax.ShapeDtypeStruct((B, OUT_SIZE), x.dtype),
        ),
        grid=grid,
        in_specs=in_specs,
        out_specs=out_specs,
        compiler_params=pltpu.CompilerParams(
            dimension_semantics=("parallel",)),   # batch tiles shard across TCs (v7x)
    )(x_tm, h0, c0, wih_t, whh_t, b, wlin_t, blin)

    return last_hidden, pred


def init_torch_params(key):
    """PyTorch-layout parameters (gate row order [i, f, g, o], uniform(-1/sqrt(H), 1/sqrt(H)))."""
    H, D = HIDDEN_SIZE, INPUT_SIZE
    k = 1.0 / jnp.sqrt(jnp.float32(H))
    keys = jax.random.split(key, 6)
    w_ih = jax.random.uniform(keys[0], (4 * H, D), jnp.float32, -k, k)
    w_hh = jax.random.uniform(keys[1], (4 * H, H), jnp.float32, -k, k)
    b_ih = jax.random.uniform(keys[2], (4 * H,), jnp.float32, -k, k)
    b_hh = jax.random.uniform(keys[3], (4 * H,), jnp.float32, -k, k)
    w_lin = jax.random.uniform(keys[4], (OUT_SIZE, H), jnp.float32, -k, k)
    b_lin = jax.random.uniform(keys[5], (OUT_SIZE,), jnp.float32, -k, k)
    return (w_ih, w_hh, b_ih, b_hh, w_lin, b_lin)


def pack_params(torch_params):
    """Offline repack for the kernel: gate permute [i,f,g,o]->[i,f,o,g], transpose for
    right-multiplies, combine biases, cast MXU weight operands to bf16."""
    w_ih, w_hh, b_ih, b_hh, w_lin, b_lin = torch_params
    H = HIDDEN_SIZE
    perm = jnp.concatenate([
        jnp.arange(0 * H, 1 * H),   # i
        jnp.arange(1 * H, 2 * H),   # f
        jnp.arange(3 * H, 4 * H),   # o
        jnp.arange(2 * H, 3 * H),   # g
    ])
    wih_t = w_ih[perm].T.astype(jnp.bfloat16)        # (D, 4H)
    whh_t = w_hh[perm].T.astype(jnp.bfloat16)        # (H, 4H)
    b = (b_ih + b_hh)[perm].reshape(1, 4 * H)        # (1, 4H) f32
    wlin_t = w_lin.T                                 # (H, 5) f32
    blin = b_lin.reshape(1, OUT_SIZE)                # (1, 5)
    return (wih_t, whh_t, b, wlin_t, blin)


def ref_forward(x, h0, c0, torch_params):
    """Pure-JAX f32 reference in the original PyTorch layout (gate order i,f,g,o)."""
    w_ih, w_hh, b_ih, b_hh, w_lin, b_lin = torch_params
    H = HIDDEN_SIZE

    def step(carry, x_t):
        h, c = carry
        gates = x_t @ w_ih.T + h @ w_hh.T + b_ih + b_hh
        i_g = jax.nn.sigmoid(gates[:, 0 * H:1 * H])
        f_g = jax.nn.sigmoid(gates[:, 1 * H:2 * H])
        g_g = jnp.tanh(gates[:, 2 * H:3 * H])
        o_g = jax.nn.sigmoid(gates[:, 3 * H:4 * H])
        c_new = f_g * c + i_g * g_g
        h_new = o_g * jnp.tanh(c_new)
        return (h_new, c_new), None

    xs = jnp.transpose(x, (1, 0, 2))  # (T, B, D)
    (h, _), _ = lax.scan(step, (h0, c0), xs)
    pred = jax.nn.sigmoid(h @ w_lin.T + b_lin)
    return h, pred


if __name__ == "__main__":
    key = jax.random.PRNGKey(0)
    k_x, k_h, k_c, k_p = jax.random.split(key, 4)

    B, T = 2, 8
    x = jax.random.normal(k_x, (B, T, INPUT_SIZE), jnp.float32)
    # h_0 / c_0 are torch.randn in the reference forward; drawn deterministically here.
    h0 = jax.random.normal(k_h, (B, HIDDEN_SIZE), jnp.float32)
    c0 = jax.random.normal(k_c, (B, HIDDEN_SIZE), jnp.float32)

    torch_params = init_torch_params(k_p)
    params = pack_params(torch_params)

    last_hidden, pred = jax.jit(my_lstm_forward)(x, h0, c0, params)
    jax.block_until_ready((last_hidden, pred))

    assert last_hidden.shape == (B, HIDDEN_SIZE)
    assert pred.shape == (B, OUT_SIZE)
    assert bool(jnp.all((pred >= 0.0) & (pred <= 1.0)))

    # Cross-check against an f32 PyTorch-layout reference (kernel uses bf16 MXU
    # operands with f32 accumulation, so tolerance is set accordingly).
    ref_h, ref_pred = jax.jit(ref_forward)(x, h0, c0, torch_params)
    assert bool(jnp.allclose(last_hidden, ref_h, atol=2e-2, rtol=2e-2)), \
        float(jnp.max(jnp.abs(last_hidden - ref_h)))
    assert bool(jnp.allclose(pred, ref_pred, atol=2e-2, rtol=2e-2)), \
        float(jnp.max(jnp.abs(pred - ref_pred)))

    print("KERNEL_OK")
</pallas_src>

<mosaic_0001>
module attributes {stable_mosaic.version = 11 : i64} {
  func.func @lstm_kernel(%arg0: i32, %arg1: memref<8x2x128xf32, #tpu.memory_space<vmem>>, %arg2: memref<2x64xf32, #tpu.memory_space<vmem>>, %arg3: memref<2x64xf32, #tpu.memory_space<vmem>>, %arg4: memref<128x256xbf16, #tpu.memory_space<vmem>>, %arg5: memref<64x256xbf16, #tpu.memory_space<vmem>>, %arg6: memref<1x256xf32, #tpu.memory_space<vmem>>, %arg7: memref<64x5xf32, #tpu.memory_space<vmem>>, %arg8: memref<1x5xf32, #tpu.memory_space<vmem>>, %arg9: memref<2x64xf32, #tpu.memory_space<vmem>>, %arg10: memref<2x5xf32, #tpu.memory_space<vmem>>) attributes {dimension_semantics = [#tpu.dimension_semantics<parallel>], iteration_bounds = array<i64: 1>, scalar_prefetch = 0 : i64, scratch_operands = 0 : i64, tpu.core_type = #tpu.core_type<tc>, window_params = [{transform_indices = @transform_0, window_bounds = array<i64: 8, 2, 128>}, {transform_indices = @transform_1, window_bounds = array<i64: 2, 64>}, {transform_indices = @transform_2, window_bounds = array<i64: 2, 64>}, {pipeline_mode = #tpu.pipeline_mode<synchronous>, transform_indices = @transform_3, window_bounds = array<i64: 128, 256>}, {pipeline_mode = #tpu.pipeline_mode<synchronous>, transform_indices = @transform_4, window_bounds = array<i64: 64, 256>}, {pipeline_mode = #tpu.pipeline_mode<synchronous>, transform_indices = @transform_5, window_bounds = array<i64: 1, 256>}, {pipeline_mode = #tpu.pipeline_mode<synchronous>, transform_indices = @transform_6, window_bounds = array<i64: 64, 5>}, {pipeline_mode = #tpu.pipeline_mode<synchronous>, transform_indices = @transform_7, window_bounds = array<i64: 1, 5>}, {transform_indices = @transform_8, window_bounds = array<i64: 2, 64>}, {transform_indices = @transform_9, window_bounds = array<i64: 2, 5>}]} {
    %c0 = arith.constant 0 : index
    %c0_0 = arith.constant 0 : index
    %c0_1 = arith.constant 0 : index
    %0 = vector.load %arg1[%c0, %c0_0, %c0_1] : memref<8x2x128xf32, #tpu.memory_space<vmem>>, vector<8x2x128xf32>
    %1 = arith.truncf %0 : vector<8x2x128xf32> to vector<8x2x128xbf16>
    %2 = vector.shape_cast %1 : vector<8x2x128xbf16> to vector<16x128xbf16>
    %c0_2 = arith.constant 0 : index
    %c0_3 = arith.constant 0 : index
    %3 = vector.load %arg4[%c0_2, %c0_3] : memref<128x256xbf16, #tpu.memory_space<vmem>>, vector<128x256xbf16>
    %cst = arith.constant dense<0.000000e+00> : vector<16x256xf32>
    %4 = tpu.matmul %2, %3, %cst {dimension_numbers = #tpu.dot_dimension_numbers<[1], [0], [0], [1], [0, 0, 1, 1], [], []>} : vector<16x128xbf16>, vector<128x256xbf16>, vector<16x256xf32> -> vector<16x256xf32>
    %c0_4 = arith.constant 0 : index
    %c0_5 = arith.constant 0 : index
    %5 = vector.load %arg6[%c0_4, %c0_5] : memref<1x256xf32, #tpu.memory_space<vmem>>, vector<1x256xf32>
    %6 = vector.broadcast %5 : vector<1x256xf32> to vector<16x256xf32>
    %7 = arith.addf %4, %6 : vector<16x256xf32>
    %c0_6 = arith.constant 0 : index
    %c0_7 = arith.constant 0 : index
    %8 = vector.load %arg5[%c0_6, %c0_7] : memref<64x256xbf16, #tpu.memory_space<vmem>>, vector<64x256xbf16>
    %c0_8 = arith.constant 0 : index
    %c0_9 = arith.constant 0 : index
    %9 = vector.load %arg2[%c0_8, %c0_9] : memref<2x64xf32, #tpu.memory_space<vmem>>, vector<2x64xf32>
    %c0_10 = arith.constant 0 : index
    %c0_11 = arith.constant 0 : index
    %10 = vector.load %arg3[%c0_10, %c0_11] : memref<2x64xf32, #tpu.memory_space<vmem>>, vector<2x64xf32>
    %11 = vector.extract_strided_slice %7 {offsets = [0, 0], sizes = [2, 256], strides = [1, 1]} : vector<16x256xf32> to vector<2x256xf32>
    %12 = arith.truncf %9 : vector<2x64xf32> to vector<2x64xbf16>
    %cst_12 = arith.constant dense<0.000000e+00> : vector<2x256xf32>
    %13 = tpu.matmul %12, %8, %cst_12 {dimension_numbers = #tpu.dot_dimension_numbers<[1], [0], [0], [1], [0, 0, 1, 1], [], []>} : vector<2x64xbf16>, vector<64x256xbf16>, vector<2x256xf32> -> vector<2x256xf32>
    %14 = arith.addf %11, %13 : vector<2x256xf32>
    %15 = vector.extract_strided_slice %14 {offsets = [0, 0], sizes = [2, 192], strides = [1, 1]} : vector<2x256xf32> to vector<2x192xf32>
    %16 = arith.negf %15 : vector<2x192xf32>
    %17 = math.exp %16 : vector<2x192xf32>
    %cst_13 = arith.constant 1.000000e+00 : f32
    %18 = vector.broadcast %cst_13 : f32 to vector<2x192xf32>
    %19 = arith.addf %18, %17 : vector<2x192xf32>
    %20 = arith.divf %18, %19 : vector<2x192xf32>
    %21 = vector.extract_strided_slice %14 {offsets = [0, 192], sizes = [2, 64], strides = [1, 1]} : vector<2x256xf32> to vector<2x64xf32>
    %22 = math.tanh %21 : vector<2x64xf32>
    %23 = vector.extract_strided_slice %20 {offsets = [0, 0], sizes = [2, 64], strides = [1, 1]} : vector<2x192xf32> to vector<2x64xf32>
    %24 = vector.extract_strided_slice %20 {offsets = [0, 64], sizes = [2, 64], strides = [1, 1]} : vector<2x192xf32> to vector<2x64xf32>
    %25 = vector.extract_strided_slice %20 {offsets = [0, 128], sizes = [2, 64], strides = [1, 1]} : vector<2x192xf32> to vector<2x64xf32>
    %26 = arith.mulf %24, %10 : vector<2x64xf32>
    %27 = arith.mulf %23, %22 : vector<2x64xf32>
    %28 = arith.addf %26, %27 : vector<2x64xf32>
    %29 = math.tanh %28 : vector<2x64xf32>
    %30 = arith.mulf %25, %29 : vector<2x64xf32>
    %31 = vector.extract_strided_slice %7 {offsets = [2, 0], sizes = [2, 256], strides = [1, 1]} : vector<16x256xf32> to vector<2x256xf32>
    %32 = arith.truncf %30 : vector<2x64xf32> to vector<2x64xbf16>
    %cst_14 = arith.constant dense<0.000000e+00> : vector<2x256xf32>
    %33 = tpu.matmul %32, %8, %cst_14 {dimension_numbers = #tpu.dot_dimension_numbers<[1], [0], [0], [1], [0, 0, 1, 1], [], []>} : vector<2x64xbf16>, vector<64x256xbf16>, vector<2x256xf32> -> vector<2x256xf32>
    %34 = arith.addf %31, %33 : vector<2x256xf32>
    %35 = vector.extract_strided_slice %34 {offsets = [0, 0], sizes = [2, 192], strides = [1, 1]} : vector<2x256xf32> to vector<2x192xf32>
    %36 = arith.negf %35 : vector<2x192xf32>
    %37 = math.exp %36 : vector<2x192xf32>
    %cst_15 = arith.constant 1.000000e+00 : f32
    %38 = vector.broadcast %cst_15 : f32 to vector<2x192xf32>
    %39 = arith.addf %38, %37 : vector<2x192xf32>
    %40 = arith.divf %38, %39 : vector<2x192xf32>
    %41 = vector.extract_strided_slice %34 {offsets = [0, 192], sizes = [2, 64], strides = [1, 1]} : vector<2x256xf32> to vector<2x64xf32>
    %42 = math.tanh %41 : vector<2x64xf32>
    %43 = vector.extract_strided_slice %40 {offsets = [0, 0], sizes = [2, 64], strides = [1, 1]} : vector<2x192xf32> to vector<2x64xf32>
    %44 = vector.extract_strided_slice %40 {offsets = [0, 64], sizes = [2, 64], strides = [1, 1]} : vector<2x192xf32> to vector<2x64xf32>
    %45 = vector.extract_strided_slice %40 {offsets = [0, 128], sizes = [2, 64], strides = [1, 1]} : vector<2x192xf32> to vector<2x64xf32>
    %46 = arith.mulf %44, %28 : vector<2x64xf32>
    %47 = arith.mulf %43, %42 : vector<2x64xf32>
    %48 = arith.addf %46, %47 : vector<2x64xf32>
    %49 = math.tanh %48 : vector<2x64xf32>
    %50 = arith.mulf %45, %49 : vector<2x64xf32>
    %51 = vector.extract_strided_slice %7 {offsets = [4, 0], sizes = [2, 256], strides = [1, 1]} : vector<16x256xf32> to vector<2x256xf32>
    %52 = arith.truncf %50 : vector<2x64xf32> to vector<2x64xbf16>
    %cst_16 = arith.constant dense<0.000000e+00> : vector<2x256xf32>
    %53 = tpu.matmul %52, %8, %cst_16 {dimension_numbers = #tpu.dot_dimension_numbers<[1], [0], [0], [1], [0, 0, 1, 1], [], []>} : vector<2x64xbf16>, vector<64x256xbf16>, vector<2x256xf32> -> vector<2x256xf32>
    %54 = arith.addf %51, %53 : vector<2x256xf32>
    %55 = vector.extract_strided_slice %54 {offsets = [0, 0], sizes = [2, 192], strides = [1, 1]} : vector<2x256xf32> to vector<2x192xf32>
    %56 = arith.negf %55 : vector<2x192xf32>
    %57 = math.exp %56 : vector<2x192xf32>
    %cst_17 = arith.constant 1.000000e+00 : f32
    %58 = vector.broadcast %cst_17 : f32 to vector<2x192xf32>
    %59 = arith.addf %58, %57 : vector<2x192xf32>
    %60 = arith.divf %58, %59 : vector<2x192xf32>
    %61 = vector.extract_strided_slice %54 {offsets = [0, 192], sizes = [2, 64], strides = [1, 1]} : vector<2x256xf32> to vector<2x64xf32>
    %62 = math.tanh %61 : vector<2x64xf32>
    %63 = vector.extract_strided_slice %60 {offsets = [0, 0], sizes = [2, 64], strides = [1, 1]} : vector<2x192xf32> to vector<2x64xf32>
    %64 = vector.extract_strided_slice %60 {offsets = [0, 64], sizes = [2, 64], strides = [1, 1]} : vector<2x192xf32> to vector<2x64xf32>
    %65 = vector.extract_strided_slice %60 {offsets = [0, 128], sizes = [2, 64], strides = [1, 1]} : vector<2x192xf32> to vector<2x64xf32>
    %66 = arith.mulf %64, %48 : vector<2x64xf32>
    %67 = arith.mulf %63, %62 : vector<2x64xf32>
    %68 = arith.addf %66, %67 : vector<2x64xf32>
    %69 = math.tanh %68 : vector<2x64xf32>
    %70 = arith.mulf %65, %69 : vector<2x64xf32>
    %71 = vector.extract_strided_slice %7 {offsets = [6, 0], sizes = [2, 256], strides = [1, 1]} : vector<16x256xf32> to vector<2x256xf32>
    %72 = arith.truncf %70 : vector<2x64xf32> to vector<2x64xbf16>
    %cst_18 = arith.constant dense<0.000000e+00> : vector<2x256xf32>
    %73 = tpu.matmul %72, %8, %cst_18 {dimension_numbers = #tpu.dot_dimension_numbers<[1], [0], [0], [1], [0, 0, 1, 1], [], []>} : vector<2x64xbf16>, vector<64x256xbf16>, vector<2x256xf32> -> vector<2x256xf32>
    %74 = arith.addf %71, %73 : vector<2x256xf32>
    %75 = vector.extract_strided_slice %74 {offsets = [0, 0], sizes = [2, 192], strides = [1, 1]} : vector<2x256xf32> to vector<2x192xf32>
    %76 = arith.negf %75 : vector<2x192xf32>
    %77 = math.exp %76 : vector<2x192xf32>
    %cst_19 = arith.constant 1.000000e+00 : f32
    %78 = vector.broadcast %cst_19 : f32 to vector<2x192xf32>
    %79 = arith.addf %78, %77 : vector<2x192xf32>
    %80 = arith.divf %78, %79 : vector<2x192xf32>
    %81 = vector.extract_strided_slice %74 {offsets = [0, 192], sizes = [2, 64], strides = [1, 1]} : vector<2x256xf32> to vector<2x64xf32>
    %82 = math.tanh %81 : vector<2x64xf32>
    %83 = vector.extract_strided_slice %80 {offsets = [0, 0], sizes = [2, 64], strides = [1, 1]} : vector<2x192xf32> to vector<2x64xf32>
    %84 = vector.extract_strided_slice %80 {offsets = [0, 64], sizes = [2, 64], strides = [1, 1]} : vector<2x192xf32> to vector<2x64xf32>
    %85 = vector.extract_strided_slice %80 {offsets = [0, 128], sizes = [2, 64], strides = [1, 1]} : vector<2x192xf32> to vector<2x64xf32>
    %86 = arith.mulf %84, %68 : vector<2x64xf32>
    %87 = arith.mulf %83, %82 : vector<2x64xf32>
    %88 = arith.addf %86, %87 : vector<2x64xf32>
    %89 = math.tanh %88 : vector<2x64xf32>
    %90 = arith.mulf %85, %89 : vector<2x64xf32>
    %91 = vector.extract_strided_slice %7 {offsets = [8, 0], sizes = [2, 256], strides = [1, 1]} : vector<16x256xf32> to vector<2x256xf32>
    %92 = arith.truncf %90 : vector<2x64xf32> to vector<2x64xbf16>
    %cst_20 = arith.constant dense<0.000000e+00> : vector<2x256xf32>
    %93 = tpu.matmul %92, %8, %cst_20 {dimension_numbers = #tpu.dot_dimension_numbers<[1], [0], [0], [1], [0, 0, 1, 1], [], []>} : vector<2x64xbf16>, vector<64x256xbf16>, vector<2x256xf32> -> vector<2x256xf32>
    %94 = arith.addf %91, %93 : vector<2x256xf32>
    %95 = vector.extract_strided_slice %94 {offsets = [0, 0], sizes = [2, 192], strides = [1, 1]} : vector<2x256xf32> to vector<2x192xf32>
    %96 = arith.negf %95 : vector<2x192xf32>
    %97 = math.exp %96 : vector<2x192xf32>
    %cst_21 = arith.constant 1.000000e+00 : f32
    %98 = vector.broadcast %cst_21 : f32 to vector<2x192xf32>
    %99 = arith.addf %98, %97 : vector<2x192xf32>
    %100 = arith.divf %98, %99 : vector<2x192xf32>
    %101 = vector.extract_strided_slice %94 {offsets = [0, 192], sizes = [2, 64], strides = [1, 1]} : vector<2x256xf32> to vector<2x64xf32>
    %102 = math.tanh %101 : vector<2x64xf32>
    %103 = vector.extract_strided_slice %100 {offsets = [0, 0], sizes = [2, 64], strides = [1, 1]} : vector<2x192xf32> to vector<2x64xf32>
    %104 = vector.extract_strided_slice %100 {offsets = [0, 64], sizes = [2, 64], strides = [1, 1]} : vector<2x192xf32> to vector<2x64xf32>
    %105 = vector.extract_strided_slice %100 {offsets = [0, 128], sizes = [2, 64], strides = [1, 1]} : vector<2x192xf32> to vector<2x64xf32>
    %106 = arith.mulf %104, %88 : vector<2x64xf32>
    %107 = arith.mulf %103, %102 : vector<2x64xf32>
    %108 = arith.addf %106, %107 : vector<2x64xf32>
    %109 = math.tanh %108 : vector<2x64xf32>
    %110 = arith.mulf %105, %109 : vector<2x64xf32>
    %111 = vector.extract_strided_slice %7 {offsets = [10, 0], sizes = [2, 256], strides = [1, 1]} : vector<16x256xf32> to vector<2x256xf32>
    %112 = arith.truncf %110 : vector<2x64xf32> to vector<2x64xbf16>
    %cst_22 = arith.constant dense<0.000000e+00> : vector<2x256xf32>
    %113 = tpu.matmul %112, %8, %cst_22 {dimension_numbers = #tpu.dot_dimension_numbers<[1], [0], [0], [1], [0, 0, 1, 1], [], []>} : vector<2x64xbf16>, vector<64x256xbf16>, vector<2x256xf32> -> vector<2x256xf32>
    %114 = arith.addf %111, %113 : vector<2x256xf32>
    %115 = vector.extract_strided_slice %114 {offsets = [0, 0], sizes = [2, 192], strides = [1, 1]} : vector<2x256xf32> to vector<2x192xf32>
    %116 = arith.negf %115 : vector<2x192xf32>
    %117 = math.exp %116 : vector<2x192xf32>
    %cst_23 = arith.constant 1.000000e+00 : f32
    %118 = vector.broadcast %cst_23 : f32 to vector<2x192xf32>
    %119 = arith.addf %118, %117 : vector<2x192xf32>
    %120 = arith.divf %118, %119 : vector<2x192xf32>
    %121 = vector.extract_strided_slice %114 {offsets = [0, 192], sizes = [2, 64], strides = [1, 1]} : vector<2x256xf32> to vector<2x64xf32>
    %122 = math.tanh %121 : vector<2x64xf32>
    %123 = vector.extract_strided_slice %120 {offsets = [0, 0], sizes = [2, 64], strides = [1, 1]} : vector<2x192xf32> to vector<2x64xf32>
    %124 = vector.extract_strided_slice %120 {offsets = [0, 64], sizes = [2, 64], strides = [1, 1]} : vector<2x192xf32> to vector<2x64xf32>
    %125 = vector.extract_strided_slice %120 {offsets = [0, 128], sizes = [2, 64], strides = [1, 1]} : vector<2x192xf32> to vector<2x64xf32>
    %126 = arith.mulf %124, %108 : vector<2x64xf32>
    %127 = arith.mulf %123, %122 : vector<2x64xf32>
    %128 = arith.addf %126, %127 : vector<2x64xf32>
    %129 = math.tanh %128 : vector<2x64xf32>
    %130 = arith.mulf %125, %129 : vector<2x64xf32>
    %131 = vector.extract_strided_slice %7 {offsets = [12, 0], sizes = [2, 256], strides = [1, 1]} : vector<16x256xf32> to vector<2x256xf32>
    %132 = arith.truncf %130 : vector<2x64xf32> to vector<2x64xbf16>
    %cst_24 = arith.constant dense<0.000000e+00> : vector<2x256xf32>
    %133 = tpu.matmul %132, %8, %cst_24 {dimension_numbers = #tpu.dot_dimension_numbers<[1], [0], [0], [1], [0, 0, 1, 1], [], []>} : vector<2x64xbf16>, vector<64x256xbf16>, vector<2x256xf32> -> vector<2x256xf32>
    %134 = arith.addf %131, %133 : vector<2x256xf32>
    %135 = vector.extract_strided_slice %134 {offsets = [0, 0], sizes = [2, 192], strides = [1, 1]} : vector<2x256xf32> to vector<2x192xf32>
    %136 = arith.negf %135 : vector<2x192xf32>
    %137 = math.exp %136 : vector<2x192xf32>
    %cst_25 = arith.constant 1.000000e+00 : f32
    %138 = vector.broadcast %cst_25 : f32 to vector<2x192xf32>
    %139 = arith.addf %138, %137 : vector<2x192xf32>
    %140 = arith.divf %138, %139 : vector<2x192xf32>
    %141 = vector.extract_strided_slice %134 {offsets = [0, 192], sizes = [2, 64], strides = [1, 1]} : vector<2x256xf32> to vector<2x64xf32>
    %142 = math.tanh %141 : vector<2x64xf32>
    %143 = vector.extract_strided_slice %140 {offsets = [0, 0], sizes = [2, 64], strides = [1, 1]} : vector<2x192xf32> to vector<2x64xf32>
    %144 = vector.extract_strided_slice %140 {offsets = [0, 64], sizes = [2, 64], strides = [1, 1]} : vector<2x192xf32> to vector<2x64xf32>
    %145 = vector.extract_strided_slice %140 {offsets = [0, 128], sizes = [2, 64], strides = [1, 1]} : vector<2x192xf32> to vector<2x64xf32>
    %146 = arith.mulf %144, %128 : vector<2x64xf32>
    %147 = arith.mulf %143, %142 : vector<2x64xf32>
    %148 = arith.addf %146, %147 : vector<2x64xf32>
    %149 = math.tanh %148 : vector<2x64xf32>
    %150 = arith.mulf %145, %149 : vector<2x64xf32>
    %151 = vector.extract_strided_slice %7 {offsets = [14, 0], sizes = [2, 256], strides = [1, 1]} : vector<16x256xf32> to vector<2x256xf32>
    %152 = arith.truncf %150 : vector<2x64xf32> to vector<2x64xbf16>
    %cst_26 = arith.constant dense<0.000000e+00> : vector<2x256xf32>
    %153 = tpu.matmul %152, %8, %cst_26 {dimension_numbers = #tpu.dot_dimension_numbers<[1], [0], [0], [1], [0, 0, 1, 1], [], []>} : vector<2x64xbf16>, vector<64x256xbf16>, vector<2x256xf32> -> vector<2x256xf32>
    %154 = arith.addf %151, %153 : vector<2x256xf32>
    %155 = vector.extract_strided_slice %154 {offsets = [0, 0], sizes = [2, 192], strides = [1, 1]} : vector<2x256xf32> to vector<2x192xf32>
    %156 = arith.negf %155 : vector<2x192xf32>
    %157 = math.exp %156 : vector<2x192xf32>
    %cst_27 = arith.constant 1.000000e+00 : f32
    %158 = vector.broadcast %cst_27 : f32 to vector<2x192xf32>
    %159 = arith.addf %158, %157 : vector<2x192xf32>
    %160 = arith.divf %158, %159 : vector<2x192xf32>
    %161 = vector.extract_strided_slice %154 {offsets = [0, 192], sizes = [2, 64], strides = [1, 1]} : vector<2x256xf32> to vector<2x64xf32>
    %162 = math.tanh %161 : vector<2x64xf32>
    %163 = vector.extract_strided_slice %160 {offsets = [0, 0], sizes = [2, 64], strides = [1, 1]} : vector<2x192xf32> to vector<2x64xf32>
    %164 = vector.extract_strided_slice %160 {offsets = [0, 64], sizes = [2, 64], strides = [1, 1]} : vector<2x192xf32> to vector<2x64xf32>
    %165 = vector.extract_strided_slice %160 {offsets = [0, 128], sizes = [2, 64], strides = [1, 1]} : vector<2x192xf32> to vector<2x64xf32>
    %166 = arith.mulf %164, %148 : vector<2x64xf32>
    %167 = arith.mulf %163, %162 : vector<2x64xf32>
    %168 = arith.addf %166, %167 : vector<2x64xf32>
    %169 = math.tanh %168 : vector<2x64xf32>
    %170 = arith.mulf %165, %169 : vector<2x64xf32>
    %c0_28 = arith.constant 0 : index
    %c0_29 = arith.constant 0 : index
    %171 = vector.load %arg9[%c0_28, %c0_29] : memref<2x64xf32, #tpu.memory_space<vmem>>, vector<2x64xf32>
    tpu.vector_store %arg9[%c0_28, %c0_29], %170 {strides = array<i32>} : memref<2x64xf32, #tpu.memory_space<vmem>>, vector<2x64xf32>,
    %c0_30 = arith.constant 0 : index
    %c0_31 = arith.constant 0 : index
    %172 = vector.load %arg7[%c0_30, %c0_31] : memref<64x5xf32, #tpu.memory_space<vmem>>, vector<64x5xf32>
    %cst_32 = arith.constant dense<0.000000e+00> : vector<2x5xf32>
    %173 = tpu.matmul %170, %172, %cst_32 {dimension_numbers = #tpu.dot_dimension_numbers<[1], [0], [0], [1], [0, 0, 1, 1], [], []>} : vector<2x64xf32>, vector<64x5xf32>, vector<2x5xf32> -> vector<2x5xf32>
    %c0_33 = arith.constant 0 : index
    %c0_34 = arith.constant 0 : index
    %174 = vector.load %arg8[%c0_33, %c0_34] : memref<1x5xf32, #tpu.memory_space<vmem>>, vector<1x5xf32>
    %175 = vector.broadcast %174 : vector<1x5xf32> to vector<2x5xf32>
    %176 = arith.addf %173, %175 : vector<2x5xf32>
    %177 = arith.negf %176 : vector<2x5xf32>
    %178 = math.exp %177 : vector<2x5xf32>
    %cst_35 = arith.constant 1.000000e+00 : f32
    %179 = vector.broadcast %cst_35 : f32 to vector<2x5xf32>
    %180 = arith.addf %179, %178 : vector<2x5xf32>
    %181 = arith.divf %179, %180 : vector<2x5xf32>
    %c0_36 = arith.constant 0 : index
    %c0_37 = arith.constant 0 : index
    %182 = vector.load %arg10[%c0_36, %c0_37] : memref<2x5xf32, #tpu.memory_space<vmem>>, vector<2x5xf32>
    tpu.vector_store %arg10[%c0_36, %c0_37], %181 {strides = array<i32>} : memref<2x5xf32, #tpu.memory_space<vmem>>, vector<2x5xf32>,
    return
  }
  func.func @transform_0(%arg0: i32) -> (i32, i32, i32) {
    %c0_i32 = arith.constant 0 : i32
    %c0_i32_0 = arith.constant 0 : i32
    %c0_i32_1 = arith.constant 0 : i32
    return %c0_i32, %arg0, %c0_i32_0 : i32, i32, i32
  }
  func.func @transform_1(%arg0: i32) -> (i32, i32) {
    %c0_i32 = arith.constant 0 : i32
    %c0_i32_0 = arith.constant 0 : i32
    return %arg0, %c0_i32 : i32, i32
  }
  func.func @transform_2(%arg0: i32) -> (i32, i32) {
    %c0_i32 = arith.constant 0 : i32
    %c0_i32_0 = arith.constant 0 : i32
    return %arg0, %c0_i32 : i32, i32
  }
  func.func @transform_3(%arg0: i32) -> (i32, i32) {
    %c0_i32 = arith.constant 0 : i32
    %c0_i32_0 = arith.constant 0 : i32
    %c0_i32_1 = arith.constant 0 : i32
    return %c0_i32, %c0_i32_0 : i32, i32
  }
  func.func @transform_4(%arg0: i32) -> (i32, i32) {
    %c0_i32 = arith.constant 0 : i32
    %c0_i32_0 = arith.constant 0 : i32
    %c0_i32_1 = arith.constant 0 : i32
    return %c0_i32, %c0_i32_0 : i32, i32
  }
  func.func @transform_5(%arg0: i32) -> (i32, i32) {
    %c0_i32 = arith.constant 0 : i32
    %c0_i32_0 = arith.constant 0 : i32
    %c0_i32_1 = arith.constant 0 : i32
    return %c0_i32, %c0_i32_0 : i32, i32
  }
  func.func @transform_6(%arg0: i32) -> (i32, i32) {
    %c0_i32 = arith.constant 0 : i32
    %c0_i32_0 = arith.constant 0 : i32
    %c0_i32_1 = arith.constant 0 : i32
    return %c0_i32, %c0_i32_0 : i32, i32
  }
  func.func @transform_7(%arg0: i32) -> (i32, i32) {
    %c0_i32 = arith.constant 0 : i32
    %c0_i32_0 = arith.constant 0 : i32
    %c0_i32_1 = arith.constant 0 : i32
    return %c0_i32, %c0_i32_0 : i32, i32
  }
  func.func @transform_8(%arg0: i32) -> (i32, i32) {
    %c0_i32 = arith.constant 0 : i32
    %c0_i32_0 = arith.constant 0 : i32
    return %arg0, %c0_i32 : i32, i32
  }
  func.func @transform_9(%arg0: i32) -> (i32, i32) {
    %c0_i32 = arith.constant 0 : i32
    %c0_i32_0 = arith.constant 0 : i32
    return %arg0, %c0_i32 : i32, i32
  }
}

</mosaic_0001>

<bundles_post_ra>
// kernel: my_lstm_forward.1
= control target key start
LH: loop header
LB: loop body
LE: loop exit
PB: predicated region body
PF: predicated region fallthrough
CT: control target
= control target key end

     0   :  { %15 = vsyncpa [#allocation3], 0  ;;  %s1786_s0 = inlined_call_operand.vmem [shape: f32[8,2,128], index: 0, kind: input, shape index: {}]   ;;  %s1787_s1 = inlined_call_operand.vmem [shape: f32[2,64], index: 1, kind: input, shape index: {}]   ;;  %s1788_s2 = inlined_call_operand.vmem [shape: f32[2,64], index: 2, kind: input, shape index: {}]   ;;  %s1789_s3 = inlined_call_operand.hbm [shape: bf16[128,256], index: 3, kind: input, shape index: {}]   ;;  %s1790_s4 = inlined_call_operand.vmem [shape: bf16[64,256], index: 4, kind: input, shape index: {}]   ;;  %s1791_s5 = inlined_call_operand.vmem [shape: f32[1,256], index: 5, kind: input, shape index: {}]   ;;  %s1792_s6 = inlined_call_operand.vmem [shape: f32[64,5], index: 6, kind: input, shape index: {}]   ;;  %s1793_s7 = inlined_call_operand.vmem [shape: f32[1,5], index: 7, kind: input, shape index: {}]   ;;  %s1794_s8 = inlined_call_operand.hbm [shape: f32[2,64], index: 8, kind: output, shape index: {0}]   ;;  %s1795_s9 = inlined_call_operand.hbm [shape: f32[2,5], index: 9, kind: output, shape index: {1}]  }
   0x1   :  { %16 = vsyncpa [#allocation4], 0 }
   0x2   :  { %17 = vsyncpa [#allocation7], 0  ;;  %s1453_s30 = smov [#allocation2]   ;;  %s1381_s13 = scalar_lea.hbm %s1789_s3, 2048 }
   0x3   :  { %s29_s10 = sshll.u32 %s1453_s30, 4  ;;  %p1382_p0 = scmp.ne.s32.totalorder %s1789_s3, %s1381_s13  ;;  %s30_s10 = int_to_ptr.vmem [resolvable:$true] %s29_s10 }
   0x4   :  { %p1385_p1 = scmp.lt.u32.totalorder %s1381_s13, %s1789_s3 }
   0x6   :  { %p1387_p2 = pnand %p1385_p1, %p1382_p0 }
   0x8   :  { %1390 = shalt.err (!%p1387_p2)
}
   0x9   :  { %s1391_s18 = scalar_lea.vmem %s30_s10, 2048  ;;  %p1396_p4 = scmp.lt.s32.totalorder %s30_s10, %s30_s10 }
   0xa   :  { %p1392_p3 = scmp.ne.s32.totalorder %s30_s10, %s1391_s18  ;;  %p1397_p5 = scmp.lt.s32.totalorder %s1391_s18, %s1391_s18 }
   0xc   :  { %p1398_p6 = por %p1397_p5, %p1396_p4 }
   0xe   :  { %p1399_p7 = pnand %p1398_p6, %p1392_p3 }
  0x10   :  { %1402 = shalt.err (!%p1399_p7)
}
  0x11   :  { %s1454_s19 = smov 128   ;;  %s1455_s20 = smov 8  }
  0x12   :  { %35 = dma.hbm_to_vmem [thread:$0]  %s1789_s3, 2048, %s30_s10, [#allocation3], %s1454_s19, %s1454_s19, %s1455_s20  }
  0x13   :  { %1447 = dma.done.wait [#allocation3], 2048  }
  0x14   :  { %1448 = vsyncadd [#allocation3], 4294965248  ;;  %v1456_v0 = vmov 0   ;;  %v1245_v1 = vld [vmem:[#allocation2 + $0x4] ss:$8 sps:$4 sm:$0xff]   ;;  %v82_v10 = vlaneseq  ;;  %vm324_vm0 = vcmask 523264  }
  0x15   :  { %360 = vmatprep.mubr.bf16.mxu1 %v1456_v0  ;;  %262 = vmatprep.mubr.bf16.mxu0 %v1456_v0  ;;  %v1247_v2 = vld [vmem:[#allocation2] ss:$8 sps:$4 sm:$0xff]   ;;  %v1248_v3 = vld [vmem:[#allocation2 + $0x14] ss:$8 sps:$4 sm:$0xff]   ;;  %v1250_v4 = vld [vmem:[#allocation2 + $0x10] ss:$8 sps:$4 sm:$0xff]  }
  0x16   :  { %230 = vmatprep.subr.bf16.mxu0 %v1245_v1  ;;  %v1251_v5 = vld [vmem:[#allocation2 + $0x24] ss:$8 sps:$4 sm:$0xff]   ;;  %v1253_v7 = vld [vmem:[#allocation2 + $0x20] ss:$8 sps:$4 sm:$0xff]   ;;  %v1254_v8 = vld [vmem:[#allocation2 + $0x34] ss:$8 sps:$4 sm:$0xff]  }
  0x17   :  { %231 = vmatpush1.bf16.msra.mxu0 %v1247_v2  ;;  %v1531_v6 = vld [vmem:[%s1790_s4 + $0x4] ss:$8 sps:$4 sm:$0xff]   ;;  %v1536_v9 = vld [vmem:[%s1790_s4] ss:$8 sps:$4 sm:$0xff]   ;;  %v1457_v11 = vmov 1966171168  }
  0x18   :  { %232 = vmatprep.subr.bf16.mxu0 %v1248_v3  ;;  %v105_v12 = vunpack.c.l.s4 %v1457_v11  ;;  %328 = vmatprep.subr.bf16.mxu1 %v1531_v6  ;;  %v1542_v13 = vld [vmem:[%s1790_s4 + $0x14] ss:$8 sps:$4 sm:$0xff]   ;;  %v1256_v14 = vld [vmem:[#allocation2 + $0x30] ss:$8 sps:$4 sm:$0xff]   ;;  %v1554_v16 = vld [vmem:[%s1790_s4 + $0x24] ss:$8 sps:$4 sm:$0xff]  }
  0x19   :  { %329 = vmatpush1.bf16.msra.mxu1 %v1536_v9  ;;  %v1549_v15 = vld [vmem:[%s1790_s4 + $0x10] ss:$8 sps:$4 sm:$0xff]   ;;  %v1556_v17 = vshrl.u32 %v82_v10, 7  ;;  %v1259_v19 = vld [vmem:[#allocation2 + $0x44] ss:$8 sps:$4 sm:$0xff]   ;;  %vm1460_vm1 = vmmov 0  }
  0x1a   :  { %330 = vmatprep.subr.bf16.mxu1 %v1542_v13  ;;  %v106_v18 = vunpack.c.0.s8 %v105_v12  ;;  %v1562_v20 = vld [vmem:[%s1790_s4 + $0x20] ss:$8 sps:$4 sm:$0xff]   ;;  %v1568_v21 = vld [vmem:[%s1790_s4 + $0x34] ss:$8 sps:$4 sm:$0xff]   ;;  %v1573_v24 = vld [vmem:[%s1790_s4 + $0x30] ss:$8 sps:$4 sm:$0xff]  }
  0x1b   :  { %233 = vmatpush1.bf16.msra.mxu0 %v1250_v4  ;;  %v1262_v22 = vld [vmem:[#allocation2 + $0x40] ss:$8 sps:$4 sm:$0xff]   ;;  %v1265_v23 = vld [vmem:[#allocation2 + $0x54] ss:$8 sps:$4 sm:$0xff]   ;;  %v50_v29 = vld [vmem:[%s1786_s0 + $0x4] sm:$0x3] }
  0x1c   :  { %234 = vmatprep.subr.bf16.mxu0 %v1251_v5  ;;  %v109_v25 = vsub.s32 %v106_v18, %v1556_v17  ;;  %v281_v26 = vld [vmem:[%s1787_s1] sm:$0x3]  ;;  %v49_v28 = vld [vmem:[%s1786_s0 + $0x2] sm:$0x3]  ;;  %v51_v30 = vld [vmem:[%s1786_s0 + $0x6] sm:$0x3] }
  0x1d   :  { %331 = vmatpush1.bf16.msra.mxu1 %v1549_v15  ;;  %v48_v27 = vld [vmem:[%s1786_s0] sm:$0x3]  ;;  %v52_v31 = vld [vmem:[%s1786_s0 + $0x8] sm:$0x3]  ;;  %v53_v33 = vld [vmem:[%s1786_s0 + $0xa] sm:$0x3]  ;;  %v1140_v36 = vpack.c.bf16 %v51_v30, %v50_v29  ;;  %v283_v42 = vpack.c.bf16 %v281_v26, %v281_v26 }
  0x1e   :  { %332 = vmatprep.subr.bf16.mxu1 %v1554_v16  ;;  %v1139_v32 = vpack.c.bf16 %v49_v28, %v48_v27  ;;  %v54_v34 = vld [vmem:[%s1786_s0 + $0xc] sm:$0x3]  ;;  %v55_v35 = vld [vmem:[%s1786_s0 + $0xe] sm:$0x3]  ;;  %v1268_v37 = vld [vmem:[#allocation2 + $0x50] ss:$8 sps:$4 sm:$0xff]   ;;  %v1141_v38 = vpack.c.bf16 %v53_v33, %v52_v31 }
  0x1f   :  { %235 = vmatpush1.bf16.msra.mxu0 %v1253_v7  ;;  %v1142_v39 = vpack.c.bf16 %v55_v35, %v54_v34  ;;  %v1271_v41 = vld [vmem:[#allocation2 + $0x64] ss:$8 sps:$4 sm:$0xff]   ;;  %v117_v43 = vrot.slane %v1140_v36, %v109_v25  ;;  %v1274_v47 = vld [vmem:[#allocation2 + $0x60] ss:$8 sps:$4 sm:$0xff]   ;;  %v1277_v49 = vld [vmem:[#allocation2 + $0x74] ss:$8 sps:$4 sm:$0xff]  }
  0x20   :  { %236 = vmatprep.subr.bf16.mxu0 %v1254_v8  ;;  %v110_v40 = vrot.slane %v1139_v32, %v109_v25  ;;  %v124_v44 = vrot.slane %v1141_v38, %v109_v25  ;;  %v1280_v52 = vld [vmem:[#allocation2 + $0x70] ss:$8 sps:$4 sm:$0xff]   ;;  %v84_v57 = vsub.s32 0, %v1556_v17  ;;  %v80_v59 = vld [vmem:[%s1791_s5] sm:$0x3]  ;;  %v88_v60 = vsub.s32 1, %v1556_v17 }
  0x21   :  { %333 = vmatpush1.bf16.msra.mxu1 %v1562_v20  ;;  %v131_v45 = vrot.slane %v1142_v39, %v109_v25  ;;  %s1458_s5 = smov 64   ;;  %v282_v12 = vld [vmem:[%s1788_s2] sm:$0x3]  ;;  %vm1011_vm2 = vcmask 523270  }
  0x22   :  { %334 = vmatprep.subr.bf16.mxu1 %v1568_v21  ;;  %v132_v46 = vcombine.low %v110_v40, %v117_v43  ;;  %v85_v61 = vrot.slane %v80_v59, %v84_v57  ;;  %v89_v62 = vrot.slane %v80_v59, %v88_v60 }
  0x23   :  { %237 = vmatpush1.bf16.msra.mxu0 %v1256_v14  ;;  %v133_v48 = vcombine.low %v124_v44, %v131_v45 }
  0x24   :  { %238 = vmatprep.subr.bf16.mxu0 %v1259_v19  ;;  %v140_v50 = vrot.slane %v132_v46, %v109_v25 }
  0x25   :  { %335 = vmatpush1.bf16.msra.mxu1 %v1573_v24  ;;  %v147_v51 = vrot.slane %v133_v48, %v109_v25 }
  0x26   :  { %409 = vmatprep.subr.bf16.mxu1 %v1531_v6 }
  0x27   :  { %239 = vmatpush1.bf16.msra.mxu0 %v1262_v22  ;;  %v148_v53 = vcombine.low %v140_v50, %v147_v51 }
  0x28   :  { %240 = vmatprep.subr.bf16.mxu0 %v1265_v23  ;;  %1167 = vmatmul.mubr.msk.bf16.vlgmr.msra.gmra.mrb[0].mxu1 %vm324_vm0, %v283_v42 }
  0x29   :  { %410 = vmatpush1.bf16.msra.mxu1 %v1536_v9  ;;  %441 = vmatprep.mubr.bf16.mxu1 %v1456_v0 }
  0x2a   :  { %411 = vmatprep.subr.bf16.mxu1 %v1542_v13 }
  0x2b   :  { %241 = vmatpush1.bf16.msra.mxu0 %v1268_v37 }
  0x2c   :  { %242 = vmatprep.subr.bf16.mxu0 %v1271_v41 }
  0x2d   :  { %412 = vmatpush1.bf16.msra.mxu1 %v1549_v15 }
  0x2e   :  { %413 = vmatprep.subr.bf16.mxu1 %v1554_v16 }
  0x2f   :  { %243 = vmatpush1.bf16.msra.mxu0 %v1274_v47 }
  0x30   :  { %244 = vmatprep.subr.bf16.mxu0 %v1277_v49 }
  0x31   :  { %414 = vmatpush1.bf16.msra.mxu1 %v1562_v20 }
  0x32   :  { %415 = vmatprep.subr.bf16.mxu1 %v1568_v21 }
  0x33   :  { %245 = vmatpush1.bf16.msra.mxu0 %v1280_v52 }
  0x34   :  { %497 = vmatprep.subr.bf16.mxu0 %v1531_v6 }
  0x35   :  { %416 = vmatpush1.bf16.msra.mxu1 %v1573_v24 }
  0x36   :  { %263 = vmatmul.mubr.bf16.vlgmr.msra.gmra.mrb[0].mxu0 %v148_v53  ;;  %585 = vmatprep.subr.bf16.mxu1 %v1531_v6 }
  0x37   :  { %498 = vmatpush1.bf16.msra.mxu0 %v1536_v9  ;;  %529 = vmatprep.mubr.bf16.mxu0 %v1456_v0 }
  0x38   :  { %499 = vmatprep.subr.bf16.mxu0 %v1542_v13 }
  0x3b   :  { %500 = vmatpush1.bf16.msra.mxu0 %v1549_v15 }
  0x3c   :  { %501 = vmatprep.subr.bf16.mxu0 %v1554_v16 }
  0x3f   :  { %502 = vmatpush1.bf16.msra.mxu0 %v1562_v20 }
  0x40   :  { %503 = vmatprep.subr.bf16.mxu0 %v1568_v21 }
  0x43   :  { %504 = vmatpush1.bf16.msra.mxu0 %v1573_v24 }
  0x44   :  { %673 = vmatprep.subr.bf16.mxu0 %v1531_v6 }
  0xfb   :  { %v362_v54 = vpop.f32.mrb[0].mxu1 }
  0xfc   :  { %v364_v55 = vpop.f32.mrb[1].mxu1 }
  0xfd   :  { %v366_v56 = vpop.f32.mrb[2].mxu1 }
  0xfe   :  { %v367_v58 = vpop.f32.mrb[3].mxu1 }
 0x109   :  { %v264_v63 = vpop.f32.mrb[0].mxu0 }
 0x10a   :  { %v1632_v1 = vadd.f32 %v264_v63, %v85_v61  ;;  %v266_v2 = vpop.f32.mrb[1].mxu0 }
 0x10b   :  { %v1634_v3 = vadd.f32 %v266_v2, %v89_v62  ;;  %v268_v4 = vpop.f32.mrb[2].mxu0 }
 0x10c   :  { %v1636_v5 = vadd.f32 %v268_v4, %v85_v61  ;;  %v270_v7 = vpop.f32.mrb[3].mxu0  ;;  %v369_v14 = vadd.f32 %v362_v54, %v1632_v1 }
 0x10d   :  { %v370_v8 = vadd.f32 %v364_v55, %v1634_v3  ;;  %v1639_v10 = vadd.f32 %v270_v7, %v89_v62 }
 0x10e   :  { %v1168_v17 = vmul.f32 -1.442695, %v369_v14 }
 0x10f   :  { %1281 = vtanh.f32 %v370_v8  ;;  %v1169_v31 = vmul.f32 -1.442695, %v370_v8 }
 0x110   :  { %1283 = vpow2.f32 %v1168_v17 }
 0x119   :  { %v1282_v11 = vpop.eup %1281 }
 0x11a   :  { %390 = vrot.lane.b32.xlu0 %v1282_v11, %s1458_s5  ;;  %v1284_v18 = vpop.eup %1283 }
 0x11b   :  { %v377_v19 = vadd.f32 1.0, %v1284_v18 }
 0x11d   :  { %1285 = vrcp.f32 %v377_v19 }
 0x11e   :  { %385 = vrot.lane.b32.xlu0 %v282_v12, %s1458_s5 }
 0x127   :  { %v1286_v22 = vpop.eup %1285 }
 0x18c   :  { %v391_v23 = vpop.permute.xlu0 %390 }
 0x18d   :  { %v393_v25 = vmul.f32 %v1286_v22, %v391_v23 }
 0x18f   :  { %395 = vrot.lane.b32.xlu1 %v393_v25, %s1458_s5 }
 0x190   :  { %v386_v26 = vpop.permute.xlu0 %385 }
 0x191   :  { %v388_v27 = vmul.f32 %v1286_v22, %v386_v26 }
 0x201   :  { %v396_v28 = vpop.permute.xlu1 %395 }
 0x202   :  { %v398_v29 = vadd.f32 %v396_v28, %v388_v27 }
 0x204   :  { %1287 = vtanh.f32 %v398_v29  ;;  %v472_v53 = vrot.slane %v398_v29, 6 }
 0x205   :  { %1289 = vpow2.f32 %v1169_v31 }
 0x20e   :  { %v1288_v30 = vpop.eup %1287 }
 0x20f   :  { %401 = vrot.lane.b32.xlu1 %v1288_v30, %s1458_s5  ;;  %v1290_v32 = vpop.eup %1289 }
 0x210   :  { %v378_v33 = vadd.f32 1.0, %v1290_v32 }
 0x212   :  { %1291 = vrcp.f32 %v378_v33 }
 0x21c   :  { %v1292_v34 = vpop.eup %1291 }
 0x281   :  { %v402_v35 = vpop.permute.xlu1 %401 }
 0x282   :  { %v404_v36 = vmul.f32 %v1292_v34, %v402_v35 }
 0x284   :  { %v405_v37 = vpack.c.bf16 %v404_v36, %v404_v36 }
 0x286   :  { %1170 = vmatmul.mubr.msk.bf16.vlgmr.msra.gmra.mrb[4].mxu1 %vm324_vm0, %v405_v37 }
 0x287   :  { %586 = vmatpush1.bf16.msra.mxu1 %v1536_v9  ;;  %617 = vmatprep.mubr.bf16.mxu1 %v1456_v0 }
 0x288   :  { %587 = vmatprep.subr.bf16.mxu1 %v1542_v13 }
 0x28b   :  { %588 = vmatpush1.bf16.msra.mxu1 %v1549_v15 }
 0x28c   :  { %589 = vmatprep.subr.bf16.mxu1 %v1554_v16 }
 0x28f   :  { %590 = vmatpush1.bf16.msra.mxu1 %v1562_v20 }
 0x290   :  { %591 = vmatprep.subr.bf16.mxu1 %v1568_v21 }
 0x293   :  { %592 = vmatpush1.bf16.msra.mxu1 %v1573_v24 }
 0x294   :  { %753 = vmatprep.subr.bf16.mxu1 %v1531_v6 }
 0x359   :  { %v443_v38 = vpop.f32.mrb[4].mxu1 }
 0x35a   :  { %v445_v39 = vpop.f32.mrb[5].mxu1  ;;  %v452_v45 = vrot.slane %v443_v38, 6 }
 0x35b   :  { %v453_v40 = vrot.slane %v445_v39, 6  ;;  %v447_v41 = vpop.f32.mrb[6].mxu1 }
 0x35c   :  { %v448_v42 = vpop.f32.mrb[7].mxu1  ;;  %v456_v46 = vadd.f32 %v452_v45, %v1632_v1 }
 0x35d   :  { %v457_v43 = vadd.f32 %v453_v40, %v1634_v3 }
 0x35e   :  { %v1171_v47 = vmul.f32 -1.442695, %v456_v46 }
 0x35f   :  { %1293 = vtanh.f32 %v457_v43  ;;  %v1172_v58 = vmul.f32 -1.442695, %v457_v43 }
 0x360   :  { %1295 = vpow2.f32 %v1171_v47 }
 0x369   :  { %v1294_v44 = vpop.eup %1293 }
 0x36a   :  { %476 = vrot.lane.b32.xlu0 %v1294_v44, %s1458_s5  ;;  %v1296_v48 = vpop.eup %1295 }
 0x36b   :  { %v464_v49 = vadd.f32 1.0, %v1296_v48 }
 0x36d   :  { %1297 = vrcp.f32 %v464_v49 }
 0x377   :  { %v1298_v50 = vpop.eup %1297 }
 0x378   :  { %v474_v54 = vmul.f32 %v1298_v50, %v472_v53 }
 0x3dc   :  { %v477_v51 = vpop.permute.xlu0 %476 }
 0x3dd   :  { %v479_v52 = vmul.f32 %v1298_v50, %v477_v51 }
 0x3df   :  { %481 = vrot.lane.b32.xlu1 %v479_v52, %s1458_s5 }
 0x451   :  { %v482_v55 = vpop.permute.xlu1 %481 }
 0x452   :  { %v484_v56 = vadd.f32 %v482_v55, %v474_v54 }
 0x454   :  { %1299 = vtanh.f32 %v484_v56  ;;  %v560_v30 = vrot.slane %v484_v56, 6 }
 0x455   :  { %1301 = vpow2.f32 %v1172_v58 }
 0x45e   :  { %v1300_v57 = vpop.eup %1299 }
 0x45f   :  { %487 = vrot.lane.b32.xlu0 %v1300_v57, %s1458_s5  ;;  %v1302_v59 = vpop.eup %1301 }
 0x460   :  { %v465_v60 = vadd.f32 1.0, %v1302_v59 }
 0x462   :  { %1303 = vrcp.f32 %v465_v60 }
 0x46c   :  { %v1304_v61 = vpop.eup %1303 }
 0x4d1   :  { %v488_v62 = vpop.permute.xlu0 %487 }
 0x4d2   :  { %v490_v63 = vmul.f32 %v1304_v61, %v488_v62 }
 0x4d4   :  { %v491_v2 = vpack.c.bf16 %v490_v63, %v490_v63 }
 0x4d6   :  { %v493_v4 = vrot.slane %v491_v2, 1 }
 0x4d8   :  { %1173 = vmatmul.mubr.msk.bf16.vlgmr.msra.gmra.mrb[4].mxu0 %vm324_vm0, %v493_v4 }
 0x4d9   :  { %674 = vmatpush1.bf16.msra.mxu0 %v1536_v9  ;;  %705 = vmatprep.mubr.bf16.mxu0 %v1456_v0 }
 0x4da   :  { %675 = vmatprep.subr.bf16.mxu0 %v1542_v13 }
 0x4dd   :  { %676 = vmatpush1.bf16.msra.mxu0 %v1549_v15 }
 0x4de   :  { %677 = vmatprep.subr.bf16.mxu0 %v1554_v16 }
 0x4e1   :  { %678 = vmatpush1.bf16.msra.mxu0 %v1562_v20 }
 0x4e2   :  { %679 = vmatprep.subr.bf16.mxu0 %v1568_v21 }
 0x4e5   :  { %680 = vmatpush1.bf16.msra.mxu0 %v1573_v24 }
 0x4e6   :  { %841 = vmatprep.subr.bf16.mxu0 %v1531_v6 }
 0x5ab   :  { %v531_v7 = vpop.f32.mrb[4].mxu0 }
 0x5ac   :  { %v533_v8 = vpop.f32.mrb[5].mxu0  ;;  %v540_v19 = vrot.slane %v531_v7, 4 }
 0x5ad   :  { %v541_v11 = vrot.slane %v533_v8, 4  ;;  %v535_v12 = vpop.f32.mrb[6].mxu0 }
 0x5ae   :  { %v536_v14 = vpop.f32.mrb[7].mxu0  ;;  %v544_v22 = vadd.f32 %v540_v19, %v1632_v1 }
 0x5af   :  { %v545_v17 = vadd.f32 %v541_v11, %v1634_v3 }
 0x5b0   :  { %v1174_v23 = vmul.f32 -1.442695, %v544_v22 }
 0x5b1   :  { %1305 = vtanh.f32 %v545_v17  ;;  %v1175_v35 = vmul.f32 -1.442695, %v545_v17 }
 0x5b2   :  { %1307 = vpow2.f32 %v1174_v23 }
 0x5bb   :  { %v1306_v18 = vpop.eup %1305 }
 0x5bc   :  { %564 = vrot.lane.b32.xlu1 %v1306_v18, %s1458_s5  ;;  %v1308_v25 = vpop.eup %1307 }
 0x5bd   :  { %v552_v26 = vadd.f32 1.0, %v1308_v25 }
 0x5bf   :  { %1309 = vrcp.f32 %v552_v26 }
 0x5c9   :  { %v1310_v27 = vpop.eup %1309 }
 0x5ca   :  { %v562_v31 = vmul.f32 %v1310_v27, %v560_v30 }
 0x62e   :  { %v565_v28 = vpop.permute.xlu1 %564 }
 0x62f   :  { %v567_v29 = vmul.f32 %v1310_v27, %v565_v28 }
 0x631   :  { %569 = vrot.lane.b32.xlu0 %v567_v29, %s1458_s5 }
 0x6a3   :  { %v570_v32 = vpop.permute.xlu0 %569 }
 0x6a4   :  { %v572_v33 = vadd.f32 %v570_v32, %v562_v31 }
 0x6a6   :  { %1311 = vtanh.f32 %v572_v33  ;;  %v648_v57 = vrot.slane %v572_v33, 6 }
 0x6a7   :  { %1313 = vpow2.f32 %v1175_v35 }
 0x6b0   :  { %v1312_v34 = vpop.eup %1311 }
 0x6b1   :  { %575 = vrot.lane.b32.xlu1 %v1312_v34, %s1458_s5  ;;  %v1314_v36 = vpop.eup %1313 }
 0x6b2   :  { %v553_v37 = vadd.f32 1.0, %v1314_v36 }
 0x6b4   :  { %1315 = vrcp.f32 %v553_v37 }
 0x6be   :  { %v1316_v38 = vpop.eup %1315 }
 0x723   :  { %v576_v39 = vpop.permute.xlu1 %575 }
 0x724   :  { %v578_v40 = vmul.f32 %v1316_v38, %v576_v39 }
 0x726   :  { %v579_v41 = vpack.c.bf16 %v578_v40, %v578_v40 }
 0x728   :  { %v581_v42 = vrot.slane %v579_v41, 2 }
 0x72a   :  { %1176 = vmatmul.mubr.msk.bf16.vlgmr.msra.gmra.mrb[8].mxu1 %vm324_vm0, %v581_v42 }
 0x72b   :  { %754 = vmatpush1.bf16.msra.mxu1 %v1536_v9  ;;  %785 = vmatprep.mubr.bf16.mxu1 %v1456_v0 }
 0x72c   :  { %755 = vmatprep.subr.bf16.mxu1 %v1542_v13 }
 0x72f   :  { %756 = vmatpush1.bf16.msra.mxu1 %v1549_v15 }
 0x730   :  { %757 = vmatprep.subr.bf16.mxu1 %v1554_v16 }
 0x733   :  { %758 = vmatpush1.bf16.msra.mxu1 %v1562_v20 }
 0x734   :  { %759 = vmatprep.subr.bf16.mxu1 %v1568_v21 }
 0x737   :  { %760 = vmatpush1.bf16.msra.mxu1 %v1573_v24 }
 0x738   :  { %929 = vmatprep.subr.bf16.mxu1 %v1531_v6 }
 0x7fd   :  { %v619_v43 = vpop.f32.mrb[8].mxu1 }
 0x7fe   :  { %v621_v44 = vpop.f32.mrb[9].mxu1  ;;  %v628_v50 = vrot.slane %v619_v43, 2 }
 0x7ff   :  { %v629_v45 = vrot.slane %v621_v44, 2  ;;  %v623_v46 = vpop.f32.mrb[10].mxu1 }
 0x800   :  { %v624_v47 = vpop.f32.mrb[11].mxu1  ;;  %v632_v51 = vadd.f32 %v628_v50, %v1632_v1 }
 0x801   :  { %v633_v48 = vadd.f32 %v629_v45, %v1634_v3 }
 0x802   :  { %v1177_v52 = vmul.f32 -1.442695, %v632_v51 }
 0x803   :  { %1317 = vtanh.f32 %v633_v48  ;;  %v1178_v61 = vmul.f32 -1.442695, %v633_v48 }
 0x804   :  { %1319 = vpow2.f32 %v1177_v52 }
 0x80d   :  { %v1318_v49 = vpop.eup %1317 }
 0x80e   :  { %652 = vrot.lane.b32.xlu0 %v1318_v49, %s1458_s5  ;;  %v1320_v53 = vpop.eup %1319 }
 0x80f   :  { %v640_v54 = vadd.f32 1.0, %v1320_v53 }
 0x811   :  { %1321 = vrcp.f32 %v640_v54 }
 0x81b   :  { %v1322_v6 = vpop.eup %1321 }
 0x81c   :  { %v650_v58 = vmul.f32 %v1322_v6, %v648_v57 }
 0x880   :  { %v653_v55 = vpop.permute.xlu0 %652 }
 0x881   :  { %v655_v56 = vmul.f32 %v1322_v6, %v653_v55 }
 0x883   :  { %657 = vrot.lane.b32.xlu1 %v655_v56, %s1458_s5 }
 0x8f5   :  { %v658_v3 = vpop.permute.xlu1 %657 }
 0x8f6   :  { %v660_v59 = vadd.f32 %v658_v3, %v650_v58 }
 0x8f8   :  { %1323 = vtanh.f32 %v660_v59  ;;  %v730_v30 = vrot.slane %v660_v59, 6 }
 0x8f9   :  { %1325 = vpow2.f32 %v1178_v61 }
 0x902   :  { %v1324_v60 = vpop.eup %1323 }
 0x903   :  { %663 = vrot.lane.b32.xlu0 %v1324_v60, %s1458_s5  ;;  %v1326_v1 = vpop.eup %1325 }
 0x904   :  { %v641_v62 = vadd.f32 1.0, %v1326_v1 }
 0x906   :  { %1327 = vrcp.f32 %v641_v62 }
 0x910   :  { %v1328_v63 = vpop.eup %1327 }
 0x975   :  { %v664_v2 = vpop.permute.xlu0 %663 }
 0x976   :  { %v666_v4 = vmul.f32 %v1328_v63, %v664_v2 }
 0x978   :  { %v667_v7 = vpack.c.bf16 %v666_v4, %v666_v4 }
 0x97a   :  { %v669_v8 = vrot.slane %v667_v7, 3 }
 0x97c   :  { %1179 = vmatmul.mubr.msk.bf16.vlgmr.msra.gmra.mrb[8].mxu0 %vm324_vm0, %v669_v8 }
 0x97d   :  { %842 = vmatpush1.bf16.msra.mxu0 %v1536_v9  ;;  %873 = vmatprep.mubr.bf16.mxu0 %v1456_v0 }
 0x97e   :  { %843 = vmatprep.subr.bf16.mxu0 %v1542_v13 }
 0x981   :  { %844 = vmatpush1.bf16.msra.mxu0 %v1549_v15 }
 0x982   :  { %845 = vmatprep.subr.bf16.mxu0 %v1554_v16 }
 0x985   :  { %846 = vmatpush1.bf16.msra.mxu0 %v1562_v20 }
 0x986   :  { %847 = vmatprep.subr.bf16.mxu0 %v1568_v21 }
 0x989   :  { %848 = vmatpush1.bf16.msra.mxu0 %v1573_v24 }
 0xa4f   :  { %v707_v11 = vpop.f32.mrb[8].mxu0 }
 0xa50   :  { %v709_v12 = vpop.f32.mrb[9].mxu0  ;;  %v714_v22 = vadd.f32 %v707_v11, %v1636_v5 }
 0xa51   :  { %v715_v14 = vadd.f32 %v709_v12, %v1639_v10  ;;  %v711_v17 = vpop.f32.mrb[10].mxu0 }
 0xa52   :  { %v712_v18 = vpop.f32.mrb[11].mxu0  ;;  %v1180_v23 = vmul.f32 -1.442695, %v714_v22 }
 0xa53   :  { %1329 = vtanh.f32 %v715_v14  ;;  %v1181_v35 = vmul.f32 -1.442695, %v715_v14 }
 0xa54   :  { %1331 = vpow2.f32 %v1180_v23 }
 0xa5d   :  { %v1330_v19 = vpop.eup %1329 }
 0xa5e   :  { %734 = vrot.lane.b32.xlu1 %v1330_v19, %s1458_s5  ;;  %v1332_v25 = vpop.eup %1331 }
 0xa5f   :  { %v722_v26 = vadd.f32 1.0, %v1332_v25 }
 0xa61   :  { %1333 = vrcp.f32 %v722_v26 }
 0xa6b   :  { %v1334_v27 = vpop.eup %1333 }
 0xa6c   :  { %v732_v31 = vmul.f32 %v1334_v27, %v730_v30 }
 0xad0   :  { %v735_v28 = vpop.permute.xlu1 %734 }
 0xad1   :  { %v737_v29 = vmul.f32 %v1334_v27, %v735_v28 }
 0xad3   :  { %739 = vrot.lane.b32.xlu0 %v737_v29, %s1458_s5 }
 0xb45   :  { %v740_v32 = vpop.permute.xlu0 %739 }
 0xb46   :  { %v742_v33 = vadd.f32 %v740_v32, %v732_v31 }
 0xb48   :  { %1335 = vtanh.f32 %v742_v33  ;;  %v816_v49 = vrot.slane %v742_v33, 6 }
 0xb49   :  { %1337 = vpow2.f32 %v1181_v35 }
 0xb52   :  { %v1336_v34 = vpop.eup %1335 }
 0xb53   :  { %745 = vrot.lane.b32.xlu1 %v1336_v34, %s1458_s5  ;;  %v1338_v36 = vpop.eup %1337 }
 0xb54   :  { %v723_v37 = vadd.f32 1.0, %v1338_v36 }
 0xb56   :  { %1339 = vrcp.f32 %v723_v37 }
 0xb60   :  { %v1340_v38 = vpop.eup %1339 }
 0xbc5   :  { %v746_v39 = vpop.permute.xlu1 %745 }
 0xbc6   :  { %v748_v40 = vmul.f32 %v1340_v38, %v746_v39 }
 0xbc8   :  { %v749_v41 = vpack.c.bf16 %v748_v40, %v748_v40 }
 0xbca   :  { %1182 = vmatmul.mubr.msk.bf16.vlgmr.msra.gmra.mrb[12].mxu1 %vm324_vm0, %v749_v41 }
 0xbcb   :  { %930 = vmatpush1.bf16.msra.mxu1 %v1536_v9  ;;  %961 = vmatprep.mubr.bf16.mxu1 %v1456_v0 }
 0xbcc   :  { %931 = vmatprep.subr.bf16.mxu1 %v1542_v13 }
 0xbcf   :  { %932 = vmatpush1.bf16.msra.mxu1 %v1549_v15 }
 0xbd0   :  { %933 = vmatprep.subr.bf16.mxu1 %v1554_v16 }
 0xbd3   :  { %934 = vmatpush1.bf16.msra.mxu1 %v1562_v20 }
 0xbd4   :  { %935 = vmatprep.subr.bf16.mxu1 %v1568_v21 }
 0xbd7   :  { %936 = vmatpush1.bf16.msra.mxu1 %v1573_v24 }
 0xc9d   :  { %v787_v42 = vpop.f32.mrb[12].mxu1 }
 0xc9e   :  { %v789_v43 = vpop.f32.mrb[13].mxu1  ;;  %v796_v13 = vrot.slane %v787_v42, 6 }
 0xc9f   :  { %v797_v44 = vrot.slane %v789_v43, 6  ;;  %v791_v45 = vpop.f32.mrb[14].mxu1 }
 0xca0   :  { %v792_v46 = vpop.f32.mrb[15].mxu1  ;;  %v800_v15 = vadd.f32 %v796_v13, %v1636_v5 }
 0xca1   :  { %v801_v9 = vadd.f32 %v797_v44, %v1639_v10 }
 0xca2   :  { %v1183_v16 = vmul.f32 -1.442695, %v800_v15 }
 0xca3   :  { %1341 = vtanh.f32 %v801_v9  ;;  %v1184_v54 = vmul.f32 -1.442695, %v801_v9 }
 0xca4   :  { %1343 = vpow2.f32 %v1183_v16  ;;  %v1014_v16 = vld [vmem:[%s1792_s6 + $0x8] sm:$0xff] }
 0xcad   :  { %v1342_v0 = vpop.eup %1341 }
 0xcae   :  { %820 = vrot.lane.b32.xlu0 %v1342_v0, %s1458_s5  ;;  %v1344_v20 = vpop.eup %1343 }
 0xcaf   :  { %v808_v21 = vadd.f32 1.0, %v1344_v20  ;;  %v1459_v20 = vmov 0.0|0.0  }
 0xcb0   :  { %1222 = vmatprep.subr.bf16.mxu0 %v1459_v20 }
 0xcb1   :  { %1345 = vrcp.f32 %v808_v21 }
 0xcbb   :  { %v1346_v24 = vpop.eup %1345 }
 0xcbc   :  { %v818_v50 = vmul.f32 %v1346_v24, %v816_v49  ;;  %v1018_v49 = vld [vmem:[%s1792_s6 + $0x28] sm:$0xff] }
 0xd20   :  { %v821_v47 = vpop.permute.xlu0 %820 }
 0xd21   :  { %v823_v48 = vmul.f32 %v1346_v24, %v821_v47  ;;  %v1016_v24 = vld [vmem:[%s1792_s6 + $0x18] sm:$0xff] }
 0xd23   :  { %825 = vrot.lane.b32.xlu1 %v823_v48, %s1458_s5  ;;  %v1017_v48 = vld [vmem:[%s1792_s6 + $0x20] sm:$0xff] }
 0xd95   :  { %v826_v51 = vpop.permute.xlu1 %825 }
 0xd96   :  { %v828_v52 = vadd.f32 %v826_v51, %v818_v50  ;;  %v1229_v50 = vpack.c.bf16 %v1018_v49, %v1017_v48 }
 0xd98   :  { %1347 = vtanh.f32 %v828_v52  ;;  %v904_v22 = vrot.slane %v828_v52, 6 }
 0xd99   :  { %1349 = vpow2.f32 %v1184_v54  ;;  %v1020_v54 = vld [vmem:[%s1792_s6 + $0x38] sm:$0xff] }
 0xda2   :  { %v1348_v53 = vpop.eup %1347 }
 0xda3   :  { %831 = vrot.lane.b32.xlu0 %v1348_v53, %s1458_s5  ;;  %v1350_v6 = vpop.eup %1349  ;;  %v1019_v53 = vld [vmem:[%s1792_s6 + $0x30] sm:$0xff] }
 0xda4   :  { %v809_v55 = vadd.f32 1.0, %v1350_v6 }
 0xda6   :  { %1351 = vrcp.f32 %v809_v55  ;;  %v1232_v55 = vpack.c.bf16 %v1020_v54, %v1019_v53 }
 0xdb0   :  { %v1352_v56 = vpop.eup %1351 }
 0xe15   :  { %v832_v57 = vpop.permute.xlu0 %831 }
 0xe16   :  { %v834_v58 = vmul.f32 %v1352_v56, %v832_v57  ;;  %v1461_v57 = vmov 0.0  }
 0xe18   :  { %v835_v3 = vpack.c.bf16 %v834_v58, %v834_v58 }
 0xe1a   :  { %v837_v59 = vrot.slane %v835_v3, 1 }
 0xe1c   :  { %1185 = vmatmul.mubr.msk.bf16.vlgmr.msra.gmra.mrb[12].mxu0 %vm324_vm0, %v837_v59 }
 0xe1d   :  { %1219 = vmatprep.mubr.msk.f32.mxu0 %vm1460_vm1, %v1461_v57 }
 0xeef   :  { %v875_v60 = vpop.f32.mrb[12].mxu0 }
 0xef0   :  { %v877_v61 = vpop.f32.mrb[13].mxu0  ;;  %v884_v7 = vrot.slane %v875_v60, 4 }
 0xef1   :  { %v885_v1 = vrot.slane %v877_v61, 4  ;;  %v879_v62 = vpop.f32.mrb[14].mxu0 }
 0xef2   :  { %v880_v63 = vpop.f32.mrb[15].mxu0  ;;  %v888_v8 = vadd.f32 %v884_v7, %v1636_v5 }
 0xef3   :  { %v889_v2 = vadd.f32 %v885_v1, %v1639_v10 }
 0xef4   :  { %v1186_v11 = vmul.f32 -1.442695, %v888_v8 }
 0xef5   :  { %1353 = vtanh.f32 %v889_v2  ;;  %v1187_v28 = vmul.f32 -1.442695, %v889_v2 }
 0xef6   :  { %1355 = vpow2.f32 %v1186_v11 }
 0xeff   :  { %v1354_v4 = vpop.eup %1353 }
 0xf00   :  { %908 = vrot.lane.b32.xlu1 %v1354_v4, %s1458_s5  ;;  %v1356_v12 = vpop.eup %1355 }
 0xf01   :  { %v896_v14 = vadd.f32 1.0, %v1356_v12 }
 0xf03   :  { %1357 = vrcp.f32 %v896_v14 }
 0xf0d   :  { %v1358_v17 = vpop.eup %1357 }
 0xf0e   :  { %v906_v23 = vmul.f32 %v1358_v17, %v904_v22 }
 0xf72   :  { %v909_v18 = vpop.permute.xlu1 %908 }
 0xf73   :  { %v911_v19 = vmul.f32 %v1358_v17, %v909_v18 }
 0xf75   :  { %913 = vrot.lane.b32.xlu0 %v911_v19, %s1458_s5 }
 0xfe7   :  { %v914_v25 = vpop.permute.xlu0 %913 }
 0xfe8   :  { %v916_v26 = vadd.f32 %v914_v25, %v906_v23 }
 0xfea   :  { %1359 = vtanh.f32 %v916_v26  ;;  %v992_v51 = vrot.slane %v916_v26, 6 }
 0xfeb   :  { %1361 = vpow2.f32 %v1187_v28 }
 0xff4   :  { %v1360_v27 = vpop.eup %1359 }
 0xff5   :  { %919 = vrot.lane.b32.xlu1 %v1360_v27, %s1458_s5  ;;  %v1362_v29 = vpop.eup %1361 }
 0xff6   :  { %v897_v30 = vadd.f32 1.0, %v1362_v29 }
 0xff8   :  { %1363 = vrcp.f32 %v897_v30 }
0x1002   :  { %v1364_v31 = vpop.eup %1363 }
0x1067   :  { %v920_v32 = vpop.permute.xlu1 %919 }
0x1068   :  { %v922_v33 = vmul.f32 %v1364_v31, %v920_v32 }
0x106a   :  { %v923_v34 = vpack.c.bf16 %v922_v33, %v922_v33 }
0x106c   :  { %v925_v35 = vrot.slane %v923_v34, 2 }
0x106e   :  { %1188 = vmatmul.mubr.msk.bf16.vlgmr.msra.gmra.mrb[16].mxu1 %vm324_vm0, %v925_v35 }
0x1141   :  { %v963_v36 = vpop.f32.mrb[16].mxu1 }
0x1142   :  { %v965_v37 = vpop.f32.mrb[17].mxu1  ;;  %v972_v43 = vrot.slane %v963_v36, 2 }
0x1143   :  { %v973_v38 = vrot.slane %v965_v37, 2  ;;  %v967_v39 = vpop.f32.mrb[18].mxu1 }
0x1144   :  { %v968_v40 = vpop.f32.mrb[19].mxu1  ;;  %v976_v44 = vadd.f32 %v972_v43, %v1636_v5  ;;  %v1015_v5 = vld [vmem:[%s1792_s6 + $0x10] sm:$0xff] }
0x1145   :  { %v977_v41 = vadd.f32 %v973_v38, %v1639_v10  ;;  %v1013_v10 = vld [vmem:[%s1792_s6] sm:$0xff]  ;;  %v1226_v47 = vpack.c.bf16 %v1016_v24, %v1015_v5  ;;  %s1462_s6 = smov [#allocation5]  }
0x1146   :  { %v1189_v45 = vmul.f32 -1.442695, %v976_v44  ;;  %v1223_v21 = vpack.c.bf16 %v1014_v16, %v1013_v10  ;;  %s1116_s26 = sshll.u32 %s1462_s6, 4  ;;  %s1117_s26 = int_to_ptr.vmem [resolvable:$true] %s1116_s26 }
0x1147   :  { %1365 = vtanh.f32 %v977_v41  ;;  %v1190_v3 = vmul.f32 -1.442695, %v977_v41  ;;  %s1403_s27 = scalar_lea.vmem %s1117_s26, 32  ;;  %p1408_p9 = scmp.lt.s32.totalorder %s1117_s26, %s1117_s26 }
0x1148   :  { %1367 = vpow2.f32 %v1189_v45  ;;  %1224 = vmatpush3.bf16.msra.mxu0 %v1223_v21  ;;  %p1404_p8 = scmp.ne.s32.totalorder %s1117_s26, %s1403_s27  ;;  %p1409_p10 = scmp.lt.s32.totalorder %s1403_s27, %s1403_s27 }
0x1149   :  { %1225 = vmatprep.subr.bf16.mxu0 %v1459_v20 }
0x114a   :  { %p1410_p11 = por %p1409_p10, %p1408_p9 }
0x114c   :  { %1227 = vmatpush3.bf16.msra.mxu0 %v1226_v47  ;;  %p1411_p12 = pnand %p1410_p11, %p1404_p8 }
0x114d   :  { %1228 = vmatprep.subr.bf16.mxu0 %v1459_v20 }
0x1150   :  { %1230 = vmatpush3.bf16.msra.mxu0 %v1229_v50 }
0x1151   :  { %v1366_v42 = vpop.eup %1365  ;;  %1231 = vmatprep.subr.bf16.mxu0 %v1459_v20 }
0x1152   :  { %996 = vrot.lane.b32.xlu0 %v1366_v42, %s1458_s5  ;;  %v1368_v46 = vpop.eup %1367 }
0x1153   :  { %v984_v9 = vadd.f32 1.0, %v1368_v46 }
0x1154   :  { %1233 = vmatpush3.bf16.msra.mxu0 %v1232_v55 }
0x1155   :  { %1369 = vrcp.f32 %v984_v9 }
0x115f   :  { %v1370_v0 = vpop.eup %1369 }
0x1160   :  { %v994_v52 = vmul.f32 %v1370_v0, %v992_v51 }
0x11c4   :  { %v997_v13 = vpop.permute.xlu0 %996 }
0x11c5   :  { %v999_v15 = vmul.f32 %v1370_v0, %v997_v13 }
0x11c7   :  { %1001 = vrot.lane.b32.xlu1 %v999_v15, %s1458_s5 }
0x1239   :  { %v1002_v6 = vpop.permute.xlu1 %1001 }
0x123a   :  { %v1004_v56 = vadd.f32 %v1002_v6, %v994_v52 }
0x123c   :  { %1371 = vtanh.f32 %v1004_v56 }
0x123d   :  { %1373 = vpow2.f32 %v1190_v3 }
0x1246   :  { %v1372_v58 = vpop.eup %1371 }
0x1247   :  { %1007 = vrot.lane.b32.xlu0 %v1372_v58, %s1458_s5  ;;  %v1374_v59 = vpop.eup %1373 }
0x1248   :  { %v985_v60 = vadd.f32 1.0, %v1374_v59 }
0x124a   :  { %1375 = vrcp.f32 %v985_v60 }
0x1254   :  { %v1376_v61 = vpop.eup %1375 }
0x12b9   :  { %v1008_v1 = vpop.permute.xlu0 %1007 }
0x12ba   :  { %v1010_v62 = vmul.f32 %v1376_v61, %v1008_v1 }
0x12bc   :  { %v1029_v63 = vrot.slane %v1010_v62, 6  ;;  %1012 = vst.msk [vmem:[#allocation5 - $0x6] sm:$0xc0] %vm1011_vm2, %v1010_v62 }
0x12be   :  { %1220 = vmatmul.mubr.msk.f32.vlgmr.msra.gmra.mrb[16].mxu0 %vm324_vm0, %v1029_v63 }
0x12bf   :  { %1414 = shalt.err (!%p1411_p12)
}
0x12c0   :  { %s1415_s30 = scalar_lea.hbm %s1794_s8, 32 }
0x12c1   :  { %p1416_p13 = scmp.ne.s32.totalorder %s1794_s8, %s1415_s30  ;;  %p1419_p0 = scmp.lt.u32.totalorder %s1415_s30, %s1794_s8 }
0x12c3   :  { %p1421_p1 = pnand %p1419_p0, %p1416_p13 }
0x12c5   :  { %1424 = shalt.err (!%p1421_p1)
}
0x12c6   :  { %1119 = dma.vmem_to_hbm [thread:$0]  %s1117_s26, 32, %s1794_s8, [#allocation4]   ;;  %v1191_v2 = vld [vmem:[%s1793_s7] ss:$0 sm:$0xff]  ;;  %vm1108_vm3 = vcmask 33792  }
0x12c7   :  { %s1463_s15 = smov [#allocation6]  }
0x12c8   :  { %s1126_s16 = sshll.u32 %s1463_s15, 4  ;;  %s1127_s16 = int_to_ptr.vmem [resolvable:$true] %s1126_s16 }
0x12c9   :  { %s1425_s17 = scalar_lea.vmem %s1127_s16, 32  ;;  %p1430_p3 = scmp.lt.s32.totalorder %s1127_s16, %s1127_s16 }
0x12ca   :  { %p1426_p2 = scmp.ne.s32.totalorder %s1127_s16, %s1425_s17  ;;  %p1431_p4 = scmp.lt.s32.totalorder %s1425_s17, %s1425_s17 }
0x12cc   :  { %p1432_p5 = por %p1431_p4, %p1430_p3 }
0x12ce   :  { %p1433_p6 = pnand %p1432_p5, %p1426_p2 }
0x1391   :  { %v1098_v4 = vpop.f32.mrb[16].mxu0 }
0x1392   :  { %v1099_v7 = vadd.f32 %v1191_v2, %v1098_v4  ;;  %v1221_v8 = vpop.f32.mrb[17].mxu0 }
0x1394   :  { %v1193_v11 = vmul.f32 -1.442695, %v1099_v7 }
0x1396   :  { %1377 = vpow2.f32 %v1193_v11 }
0x13a0   :  { %v1378_v12 = vpop.eup %1377 }
0x13a1   :  { %v1105_v14 = vadd.f32 1.0, %v1378_v12 }
0x13a3   :  { %1379 = vrcp.f32 %v1105_v14 }
0x13ad   :  { %v1380_v17 = vpop.eup %1379 }
0x13ae   :  { %1109 = vst.msk [vmem:[#allocation6] sm:$0x3] %vm1108_vm3, %v1380_v17 }
0x13af   :  { %1436 = shalt.err (!%p1433_p6)
}
0x13b0   :  { %s1437_s18 = scalar_lea.hbm %s1795_s9, 32 }
0x13b1   :  { %p1438_p7 = scmp.ne.s32.totalorder %s1795_s9, %s1437_s18  ;;  %p1441_p8 = scmp.lt.u32.totalorder %s1437_s18, %s1795_s9 }
0x13b3   :  { %p1443_p9 = pnand %p1441_p8, %p1438_p7 }
0x13b5   :  { %1446 = shalt.err (!%p1443_p9)
}
0x13b6   :  { %1129 = dma.vmem_to_hbm [thread:$0]  %s1127_s16, 32, %s1795_s9, [#allocation7]  }
0x13b7   :  { %1449 = dma.done.wait [#allocation4], 32  }
0x13b8   :  { %1450 = vsyncadd [#allocation4], 4294967264 }
0x13b9   :  { %1451 = dma.done.wait [#allocation7], 32  }
0x13ba   :  { %1452 = vsyncadd [#allocation7], 4294967264 }
0x13bb   :  { %1136 = vsyncpa [#allocation3], 1 }
0x13bc   :  { %1137 = vsyncpa [#allocation4], 1 }
0x13bd   :  { %1138 = vsyncpa [#allocation7], 1 }

</bundles_post_ra>
